<compile_context>
chip_gen: v7x
topology: tpu7x:2x2x1
jax: 0.10.0
libtpu: 0.0.40
codegen_flags: <defaults>
</compile_context>

<pallas_src>
import jax
import jax.numpy as jnp
from jax.experimental import pallas as pl
from jax.experimental.pallas import tpu as pltpu

N_EMBD = 384        # C (module constant)
BLOCK_SIZE = 256    # max sequence length (module constant)
_MIB = 1024 * 1024


def _head_kernel(x_ref, wqkv_ref, o_ref):
    # x_ref: (Bb, T, C)    wqkv_ref: (C, 3*sec) bf16 (q|k|v, zero-padded
    # sections of width sec >= 128)    o_ref: (Bb, T, H)
    Bb, T, C = x_ref.shape
    sec = wqkv_ref.shape[1] // 3      # lane-aligned section width
    H = o_ref.shape[-1]               # true head size

    # ---- fused QKV projection: one MXU matmul, bf16 in / f32 accumulate.
    # x normally arrives already in bf16 (producer dtype); the cast is then a
    # no-op.  Leading-dim reshape only (no lane movement).
    x2 = x_ref[...].reshape(Bb * T, C).astype(jnp.bfloat16)
    qkv = jnp.dot(x2, wqkv_ref[...], preferred_element_type=jnp.float32)
    qkv = qkv.reshape(Bb, T, 3 * sec)

    # Scale q (T*H mults) instead of the (T,T) score matrix (T*T mults).
    scale = jnp.float32(C) ** jnp.float32(-0.5)
    # Sections start at lane offsets 0 / sec / 2*sec (multiples of 128), so
    # these H-wide slices need no cross-lane rotate / relayout.
    q = (qkv[:, :, 0:H] * scale).astype(jnp.bfloat16)
    k = qkv[:, :, sec:sec + H].astype(jnp.bfloat16)
    v = qkv[:, :, 2 * sec:2 * sec + H].astype(jnp.bfloat16)

    # ---- attention scores (bf16 MXU, f32 accumulate)
    s = jnp.einsum('bqh,bkh->bqk', q, k, preferred_element_type=jnp.float32)

    # causal (lower-triangular) mask == tril[:T, :T]; diagonal stays unmasked
    row = jax.lax.broadcasted_iota(jnp.int32, (T, T), 0)
    col = jax.lax.broadcasted_iota(jnp.int32, (T, T), 1)
    s = jnp.where((col <= row)[None, :, :], s, -jnp.inf)

    # ---- numerically-stable softmax, f32 math; divide goes to the EUP.
    m = jnp.max(s, axis=-1, keepdims=True)
    e = jnp.exp(s - m)
    denom = jnp.sum(e, axis=-1, keepdims=True)    # >= 1: diagonal unmasked
    p = (e * pl.reciprocal(denom, approx=True)).astype(jnp.bfloat16)

    # dropout == identity (eval mode)

    # ---- PV matmul (bf16 MXU, f32 accumulate)
    out = jnp.einsum('bqk,bkh->bqh', p, v, preferred_element_type=jnp.float32)
    o_ref[...] = out.astype(o_ref.dtype)


def _chip_policy():
    """Returns (two_tensorcores, max_batch_block, vmem_limit_bytes)."""
    gen = 0
    try:
        kind = jax.devices()[0].device_kind.lower()
        for g in (7, 6, 5, 4):
            if f"v{g}" in kind:
                gen = g
                break
    except Exception:
        pass
    two_tc = (gen == 7)                      # v7x megacore: grid shared by 2 TCs
    max_bb = 16 if gen == 6 else 8           # v6e: 128 MiB VMEM, single TC
    # Physical VMEM: 128 MiB (v5e/v6e), 64 MiB (v7x).  Unknown -> conservative.
    vmem_limit = 48 * _MIB if gen in (7, 0) else 64 * _MIB
    try:  # refine with the real capacity when the query API is available
        cap = int(pltpu.get_tpu_info().vmem_capacity_bytes)
        vmem_limit = min(vmem_limit, (cap * 3) // 4)
    except Exception:
        pass
    return two_tc, max_bb, vmem_limit


def _step_vmem_bytes(bb, T, C, sec3, H, x_bytes, o_bytes):
    """Rough per-grid-step VMEM working set (double-buffered I/O + temps)."""
    x_bufs = 2 * bb * T * C * x_bytes        # pipelined input block
    w_bufs = 2 * C * sec3 * 2                # resident bf16 fused weight
    o_bufs = 2 * bb * T * H * o_bytes        # pipelined output block
    qkv = bb * T * sec3 * 4                  # f32 projection result
    soft = 3 * bb * T * T * 4                # s / e / p upper bound (f32)
    acc = bb * T * H * 4                     # f32 PV accumulator
    return x_bufs + w_bufs + o_bufs + qkv + soft + acc + _MIB  # + slack


def _pick_batch_block(B, max_bb, two_tc, fits):
    """Largest divisor of B that is <= max_bb and fits in VMEM.  On 2-TC
    chips (v7x) prefer leaving >= 2 grid steps so megacore can shard the
    batch axis; on single-TC chips extra steps are pure overhead."""
    divisors = [d for d in range(1, min(B, max_bb) + 1) if B % d == 0 and fits(d)]
    if not divisors:
        return 1
    if two_tc:
        multi = [d for d in divisors if (B // d) >= 2]
        if multi:
            return max(multi)
        # fall through: B too small for 2 batch steps (see TODO at top of file)
    return max(divisors)


def head_forward(x, w_key, w_query, w_value, *, max_batch_block=None):
    """Single-head causal self-attention, eval-mode forward.

    x: (B, T, C); w_*: (C, head_size)  ->  (B, T, head_size), dtype == x.dtype.
    Feed x in bfloat16 for best performance (the kernel is HBM-bound, so the
    activation dtype at the pallas_call boundary sets the wall clock).
    """
    B, T, C = x.shape
    H = w_key.shape[1]
    assert C == w_key.shape[0] == w_query.shape[0] == w_value.shape[0]
    assert w_query.shape[1] == H and w_value.shape[1] == H
    assert T <= BLOCK_SIZE

    two_tc, chip_max_bb, vmem_limit = _chip_policy()
    max_bb = chip_max_bb if max_batch_block is None else max_batch_block

    # Fused projection weight, column order (q | k | v), each section padded
    # with zero columns to a multiple of 128 lanes (lane-aligned slices in the
    # kernel; zero columns contribute nothing numerically).  Cast to bf16 here
    # (tiny: ~288 KiB; constant index_map so it is fetched once).
    sec = ((H + 127) // 128) * 128
    pad = jnp.zeros((C, sec - H), dtype=w_key.dtype)
    w_qkv = jnp.concatenate(
        [w_query, pad, w_key, pad, w_value, pad], axis=1).astype(jnp.bfloat16)

    x_bytes = jnp.dtype(x.dtype).itemsize
    o_bytes = x_bytes  # output dtype matches x

    def fits(bb):
        return _step_vmem_bytes(bb, T, C, 3 * sec, H, x_bytes, o_bytes) \
            <= (vmem_limit * 9) // 10

    Bb = _pick_batch_block(B, max_bb, two_tc, fits)
    grid = (B // Bb,)

    grid_spec = pltpu.PrefetchScalarGridSpec(
        num_scalar_prefetch=0,
        grid=grid,
        in_specs=[
            pl.BlockSpec((Bb, T, C), lambda b: (b, 0, 0)),   # Bb batches / step
            pl.BlockSpec((C, 3 * sec), lambda b: (0, 0)),    # resident weight
        ],
        out_specs=pl.BlockSpec((Bb, T, H), lambda b: (b, 0, 0)),
    )

    cost = pl.CostEstimate(
        flops=int(2 * B * T * C * (3 * sec) + 4 * B * T * T * H),
        transcendentals=int(B * T * T),
        bytes_accessed=int(B * T * C * x_bytes + C * 3 * sec * 2
                           + B * T * H * o_bytes),
    )

    return pl.pallas_call(
        _head_kernel,
        out_shape=jax.ShapeDtypeStruct((B, T, H), x.dtype),
        grid_spec=grid_spec,
        compiler_params=pltpu.CompilerParams(
            dimension_semantics=("parallel",),
            vmem_limit_bytes=int(vmem_limit),
        ),
        cost_estimate=cost,
    )(x, w_qkv)


def head_reference(x, w_key, w_query, w_value):
    """Plain-JAX f32 reference, mirrors the PyTorch forward exactly (eval)."""
    B, T, C = x.shape
    xf = x.astype(jnp.float32)
    k = xf @ w_key.astype(jnp.float32)
    q = xf @ w_query.astype(jnp.float32)
    v = xf @ w_value.astype(jnp.float32)
    wei = (q @ jnp.swapaxes(k, -2, -1)) * (C ** -0.5)
    mask = jnp.tril(jnp.ones((T, T), dtype=bool))
    wei = jnp.where(mask[None, :, :], wei, -jnp.inf)
    wei = jax.nn.softmax(wei, axis=-1)
    return wei @ v


if __name__ == "__main__":
    key = jax.random.PRNGKey(0)
    C = N_EMBD
    head_size = 64
    bound = 1.0 / (C ** 0.5)

    def make_inputs(k_, B, T, x_dtype):
        kx, kk, kq, kv = jax.random.split(k_, 4)
        # The test fixture casts x once at construction to simulate a bf16
        # producer feeding the kernel (the wrapper itself never re-casts x).
        x = jax.random.normal(kx, (B, T, C), dtype=jnp.float32).astype(x_dtype)
        w_key = jax.random.uniform(kk, (C, head_size), jnp.float32, -bound, bound)
        w_query = jax.random.uniform(kq, (C, head_size), jnp.float32, -bound, bound)
        w_value = jax.random.uniform(kv, (C, head_size), jnp.float32, -bound, bound)
        return x, w_key, w_query, w_value

    # bf16 producer path (preferred), a shape that exercises batch blocking,
    # and an f32-input sanity case.
    cases = [(2, 8, jnp.bfloat16), (8, 16, jnp.bfloat16), (2, 8, jnp.float32)]
    for (B, T, x_dtype) in cases:
        x, wk, wq, wv = make_inputs(
            jax.random.fold_in(key, B * 1000 + T), B, T, x_dtype)
        out = jax.block_until_ready(head_forward(x, wk, wq, wv))
        assert out.shape == (B, T, head_size)
        assert out.dtype == x_dtype
        ref = head_reference(x, wk, wq, wv)
        # bf16 MXU operands / bf16 activation+output rounding (f32 accumulate)
        # loosen the tolerance vs the pure-f32 reference.
        out32 = out.astype(jnp.float32)
        assert jnp.allclose(out32, ref, atol=2e-2, rtol=2e-2), (
            f"mismatch vs reference at B={B}, T={T}, dtype={x_dtype}: "
            f"max abs err = {float(jnp.max(jnp.abs(out32 - ref)))}")

    print("KERNEL_OK")
</pallas_src>

<mosaic_0001>
module attributes {stable_mosaic.version = 11 : i64} {
  func.func @_head_kernel(%arg0: i32, %arg1: memref<2x8x384xbf16, #tpu.memory_space<vmem>>, %arg2: memref<384x384xbf16, #tpu.memory_space<vmem>>, %arg3: memref<2x8x64xbf16, #tpu.memory_space<vmem>>) attributes {dimension_semantics = [#tpu.dimension_semantics<parallel>], iteration_bounds = array<i64: 1>, scalar_prefetch = 0 : i64, scratch_operands = 0 : i64, tpu.core_type = #tpu.core_type<tc>, window_params = [{transform_indices = @transform_0, window_bounds = array<i64: 2, 8, 384>}, {pipeline_mode = #tpu.pipeline_mode<synchronous>, transform_indices = @transform_1, window_bounds = array<i64: 384, 384>}, {transform_indices = @transform_2, window_bounds = array<i64: 2, 8, 64>}]} {
    %c0 = arith.constant 0 : index
    %c0_0 = arith.constant 0 : index
    %c0_1 = arith.constant 0 : index
    %0 = vector.load %arg1[%c0, %c0_0, %c0_1] : memref<2x8x384xbf16, #tpu.memory_space<vmem>>, vector<2x8x384xbf16>
    %1 = vector.shape_cast %0 : vector<2x8x384xbf16> to vector<16x384xbf16>
    %c0_2 = arith.constant 0 : index
    %c0_3 = arith.constant 0 : index
    %2 = vector.load %arg2[%c0_2, %c0_3] : memref<384x384xbf16, #tpu.memory_space<vmem>>, vector<384x384xbf16>
    %cst = arith.constant dense<0.000000e+00> : vector<16x384xf32>
    %3 = tpu.matmul %1, %2, %cst {dimension_numbers = #tpu.dot_dimension_numbers<[1], [0], [0], [1], [0, 0, 1, 1], [], []>} : vector<16x384xbf16>, vector<384x384xbf16>, vector<16x384xf32> -> vector<16x384xf32>
    %4 = vector.shape_cast %3 : vector<16x384xf32> to vector<2x8x384xf32>
    %cst_4 = arith.constant 3.840000e+02 : f32
    %cst_5 = arith.constant -5.000000e-01 : f32
    %5 = math.powf %cst_4, %cst_5 : f32
    %6 = vector.extract_strided_slice %4 {offsets = [0, 0, 0], sizes = [2, 8, 64], strides = [1, 1, 1]} : vector<2x8x384xf32> to vector<2x8x64xf32>
    %7 = vector.broadcast %5 : f32 to vector<2x8x64xf32>
    %8 = arith.mulf %6, %7 : vector<2x8x64xf32>
    %9 = arith.truncf %8 : vector<2x8x64xf32> to vector<2x8x64xbf16>
    %10 = vector.extract_strided_slice %4 {offsets = [0, 0, 128], sizes = [2, 8, 64], strides = [1, 1, 1]} : vector<2x8x384xf32> to vector<2x8x64xf32>
    %11 = arith.truncf %10 : vector<2x8x64xf32> to vector<2x8x64xbf16>
    %12 = vector.extract_strided_slice %4 {offsets = [0, 0, 256], sizes = [2, 8, 64], strides = [1, 1, 1]} : vector<2x8x384xf32> to vector<2x8x64xf32>
    %13 = arith.truncf %12 : vector<2x8x64xf32> to vector<2x8x64xbf16>
    "tpu.trace_start"() <{level = 10 : i32, message = "bqh,bkh->bqk"}> : () -> ()
    %cst_6 = arith.constant dense<0.000000e+00> : vector<2x8x8xf32>
    %14 = tpu.matmul %9, %11, %cst_6 {dimension_numbers = #tpu.dot_dimension_numbers<[2], [2], [1], [1], [0, 0, 0, 1, 1, 1], [0], [0]>} : vector<2x8x64xbf16>, vector<2x8x64xbf16>, vector<2x8x8xf32> -> vector<2x8x8xf32>
    "tpu.trace_stop"() : () -> ()
    %15 = tpu.iota {dimensions = array<i32: 0>} : vector<8x8xi32>
    %16 = tpu.iota {dimensions = array<i32: 1>} : vector<8x8xi32>
    %17 = arith.cmpi sle, %16, %15 : vector<8x8xi32>
    %18 = vector.shape_cast %17 : vector<8x8xi1> to vector<1x8x8xi1>
    %cst_7 = arith.constant 0xFF800000 : f32
    %19 = vector.shape_cast %18 : vector<1x8x8xi1> to vector<1x8x8xi1>
    %20 = vector.broadcast %19 : vector<1x8x8xi1> to vector<2x8x8xi1>
    %21 = vector.broadcast %cst_7 : f32 to vector<2x8x8xf32>
    %22 = arith.select %20, %14, %21 : vector<2x8x8xi1>, vector<2x8x8xf32>
    %cst_8 = arith.constant dense<0xFF800000> : vector<2x8xf32>
    %23 = vector.multi_reduction <maximumf>, %22, %cst_8 [2] : vector<2x8x8xf32> to vector<2x8xf32>
    %24 = vector.shape_cast %23 : vector<2x8xf32> to vector<2x8x1xf32>
    %25 = vector.broadcast %24 : vector<2x8x1xf32> to vector<2x8x8xf32>
    %26 = arith.subf %22, %25 : vector<2x8x8xf32>
    %27 = math.exp %26 : vector<2x8x8xf32>
    %cst_9 = arith.constant dense<0.000000e+00> : vector<2x8xf32>
    %28 = vector.multi_reduction <add>, %27, %cst_9 [2] : vector<2x8x8xf32> to vector<2x8xf32>
    %29 = vector.shape_cast %28 : vector<2x8xf32> to vector<2x8x1xf32>
    %30 = tpu.reciprocal %29 {approx = true} : vector<2x8x1xf32> -> vector<2x8x1xf32>
    %31 = vector.broadcast %30 : vector<2x8x1xf32> to vector<2x8x8xf32>
    %32 = arith.mulf %27, %31 : vector<2x8x8xf32>
    %33 = arith.truncf %32 : vector<2x8x8xf32> to vector<2x8x8xbf16>
    "tpu.trace_start"() <{level = 10 : i32, message = "bqk,bkh->bqh"}> : () -> ()
    %cst_10 = arith.constant dense<0.000000e+00> : vector<2x8x64xf32>
    %34 = tpu.matmul %33, %13, %cst_10 {dimension_numbers = #tpu.dot_dimension_numbers<[2], [1], [1], [2], [0, 0, 0, 1, 1, 2], [0], [0]>} : vector<2x8x8xbf16>, vector<2x8x64xbf16>, vector<2x8x64xf32> -> vector<2x8x64xf32>
    "tpu.trace_stop"() : () -> ()
    %35 = arith.truncf %34 : vector<2x8x64xf32> to vector<2x8x64xbf16>
    %c0_11 = arith.constant 0 : index
    %c0_12 = arith.constant 0 : index
    %c0_13 = arith.constant 0 : index
    %36 = vector.load %arg3[%c0_11, %c0_12, %c0_13] : memref<2x8x64xbf16, #tpu.memory_space<vmem>>, vector<2x8x64xbf16>
    tpu.vector_store %arg3[%c0_11, %c0_12, %c0_13], %35 {strides = array<i32>} : memref<2x8x64xbf16, #tpu.memory_space<vmem>>, vector<2x8x64xbf16>,
    return
  }
  func.func @transform_0(%arg0: i32) -> (i32, i32, i32) {
    %c0_i32 = arith.constant 0 : i32
    %c0_i32_0 = arith.constant 0 : i32
    %c0_i32_1 = arith.constant 0 : i32
    return %arg0, %c0_i32, %c0_i32_0 : i32, i32, i32
  }
  func.func @transform_1(%arg0: i32) -> (i32, i32) {
    %c0_i32 = arith.constant 0 : i32
    %c0_i32_0 = arith.constant 0 : i32
    %c0_i32_1 = arith.constant 0 : i32
    return %c0_i32, %c0_i32_0 : i32, i32
  }
  func.func @transform_2(%arg0: i32) -> (i32, i32, i32) {
    %c0_i32 = arith.constant 0 : i32
    %c0_i32_0 = arith.constant 0 : i32
    %c0_i32_1 = arith.constant 0 : i32
    return %arg0, %c0_i32, %c0_i32_0 : i32, i32, i32
  }
}

</mosaic_0001>

<bundles_post_ra>
// kernel: tpu_custom_call.1
= control target key start
LH: loop header
LB: loop body
LE: loop exit
PB: predicated region body
PF: predicated region fallthrough
CT: control target
= control target key end

     0   :  { %7 = vsyncpa [#allocation3], 0  ;;  %s1409_s0 = inlined_call_operand.hbm [shape: bf16[2,8,384], index: 0, kind: input, shape index: {}]   ;;  %s1410_s1 = inlined_call_operand.hbm [shape: bf16[384,384], index: 1, kind: input, shape index: {}]   ;;  %s1411_s2 = inlined_call_operand.hbm [shape: bf16[2,8,64], index: 2, kind: output, shape index: {}]  }
   0x1   :  { %8 = vsyncpa [#allocation6], 0 }
   0x2   :  { %9 = vsyncpa [#allocation4], 0  ;;  %s1316_s9 = smov [#allocation2]   ;;  %s1244_s13 = scalar_lea.hbm %s1409_s0, 384 }
   0x3   :  { %s15_s10 = sshll.u32 %s1316_s9, 4  ;;  %p1245_p0 = scmp.ne.s32.totalorder %s1409_s0, %s1244_s13  ;;  %s16_s10 = int_to_ptr.vmem [resolvable:$true] %s15_s10 }
   0x4   :  { %p1248_p1 = scmp.lt.u32.totalorder %s1244_s13, %s1409_s0 }
   0x6   :  { %p1250_p2 = pnand %p1248_p1, %p1245_p0 }
   0x8   :  { %1253 = shalt.err (!%p1250_p2)
}
   0x9   :  { %s1254_s18 = scalar_lea.vmem %s16_s10, 384  ;;  %p1259_p4 = scmp.lt.s32.totalorder %s16_s10, %s16_s10 }
   0xa   :  { %p1255_p3 = scmp.ne.s32.totalorder %s16_s10, %s1254_s18  ;;  %p1260_p5 = scmp.lt.s32.totalorder %s1254_s18, %s1254_s18 }
   0xc   :  { %p1261_p6 = por %p1260_p5, %p1259_p4 }
   0xe   :  { %p1262_p7 = pnand %p1261_p6, %p1255_p3 }
  0x10   :  { %1265 = shalt.err (!%p1262_p7)
}
  0x11   :  { %s1317_s19 = smov 192   ;;  %s1318_s20 = smov 12  }
  0x12   :  { %21 = dma.hbm_to_vmem [thread:$0]  %s1409_s0, 384, %s16_s10, [#allocation3], %s1317_s19, %s1317_s19, %s1318_s20  }
  0x13   :  { %s1319_s23 = smov [#allocation5]   ;;  %s1266_s27 = scalar_lea.hbm %s1410_s1, 9216 }
  0x14   :  { %s27_s24 = sshll.u32 %s1319_s23, 4  ;;  %p1267_p8 = scmp.ne.s32.totalorder %s1410_s1, %s1266_s27  ;;  %s28_s24 = int_to_ptr.vmem [resolvable:$true] %s27_s24 }
  0x15   :  { %p1270_p9 = scmp.lt.u32.totalorder %s1266_s27, %s1410_s1 }
  0x17   :  { %p1272_p10 = pnand %p1270_p9, %p1267_p8 }
  0x19   :  { %1275 = shalt.err (!%p1272_p10)
}
  0x1a   :  { %s1276_s4 = scalar_lea.vmem %s28_s24, 9216  ;;  %p1281_p12 = scmp.lt.s32.totalorder %s28_s24, %s28_s24 }
  0x1b   :  { %p1277_p11 = scmp.ne.s32.totalorder %s28_s24, %s1276_s4  ;;  %p1282_p13 = scmp.lt.s32.totalorder %s1276_s4, %s1276_s4 }
  0x1d   :  { %p1283_p0 = por %p1282_p13, %p1281_p12 }
  0x1f   :  { %p1284_p1 = pnand %p1283_p0, %p1277_p11 }
  0x21   :  { %1287 = shalt.err (!%p1284_p1)
}
  0x22   :  { %33 = dma.hbm_to_vmem [thread:$0]  %s1410_s1, 9216, %s28_s24, [#allocation6], %s1317_s19, %s1317_s19, %s1318_s20  }
  0x23   :  { %1310 = dma.done.wait [#allocation3], 384  }
  0x24   :  { %1311 = vsyncadd [#allocation3], 4294966912 }
  0x25   :  { %1312 = dma.done.wait [#allocation6], 9216  }
  0x26   :  { %1313 = vsyncadd [#allocation6], 4294958080  ;;  %v1136_v0 = vld [vmem:[#allocation5 + $0x4] ss:$12 sps:$4 sm:$0xff]   ;;  %v1138_v1 = vld [vmem:[#allocation5] ss:$12 sps:$4 sm:$0xff]  }
  0x27   :  { %541 = vmatprep.subr.bf16.mxu0 %v1136_v0  ;;  %v1139_v2 = vld [vmem:[#allocation5 + $0x1c] ss:$12 sps:$4 sm:$0xff]   ;;  %v1141_v3 = vld [vmem:[#allocation5 + $0x18] ss:$12 sps:$4 sm:$0xff]   ;;  %v1142_v4 = vld [vmem:[#allocation5 + $0x34] ss:$12 sps:$4 sm:$0xff]  }
  0x28   :  { %542 = vmatpush1.bf16.msra.mxu0 %v1138_v1  ;;  %v1144_v5 = vld [vmem:[#allocation5 + $0x30] ss:$12 sps:$4 sm:$0xff]   ;;  %v1145_v6 = vld [vmem:[#allocation5 + $0x4c] ss:$12 sps:$4 sm:$0xff]   ;;  %v1147_v7 = vld [vmem:[#allocation5 + $0x48] ss:$12 sps:$4 sm:$0xff]  }
  0x29   :  { %543 = vmatprep.subr.bf16.mxu0 %v1139_v2  ;;  %v1148_v8 = vld [vmem:[#allocation5 + $0x64] ss:$12 sps:$4 sm:$0xff]   ;;  %v1150_v9 = vld [vmem:[#allocation5 + $0x60] ss:$12 sps:$4 sm:$0xff]   ;;  %v1151_v10 = vld [vmem:[#allocation5 + $0x7c] ss:$12 sps:$4 sm:$0xff]  }
  0x2a   :  { %v1153_v11 = vld [vmem:[#allocation5 + $0x78] ss:$12 sps:$4 sm:$0xff]   ;;  %v1154_v12 = vld [vmem:[#allocation5 + $0x94] ss:$12 sps:$4 sm:$0xff]   ;;  %v1156_v14 = vld [vmem:[#allocation5 + $0x90] ss:$12 sps:$4 sm:$0xff]  }
  0x2b   :  { %v1186_v13 = vld [vmem:[#allocation2 + $0x4] ss:$12 sps:$4 sm:$0xff]   ;;  %v1159_v16 = vld [vmem:[#allocation5 + $0xa8] ss:$12 sps:$4 sm:$0xff]   ;;  %v1160_v17 = vld [vmem:[#allocation5 + $0xc4] ss:$12 sps:$4 sm:$0xff]  }
  0x2c   :  { %544 = vmatpush1.bf16.msra.mxu0 %v1141_v3  ;;  %v1157_v15 = vld [vmem:[#allocation5 + $0xac] ss:$12 sps:$4 sm:$0xff]   ;;  %573 = vmatprep.mubr.bf16.mxu0 %v1186_v13  ;;  %v1163_v19 = vld [vmem:[#allocation5 + $0xdc] ss:$12 sps:$4 sm:$0xff]   ;;  %v1166_v21 = vld [vmem:[#allocation5 + $0xf4] ss:$12 sps:$4 sm:$0xff]  }
  0x2d   :  { %545 = vmatprep.subr.bf16.mxu0 %v1142_v4  ;;  %659 = vmatprep.mubr.bf16.mxu1 %v1186_v13  ;;  %v1162_v18 = vld [vmem:[#allocation5 + $0xc0] ss:$12 sps:$4 sm:$0xff]   ;;  %v1165_v20 = vld [vmem:[#allocation5 + $0xd8] ss:$12 sps:$4 sm:$0xff]   ;;  %v1212_v22 = vld [vmem:[#allocation5 + $0xc8] ss:$12 sps:$4 sm:$0xff]  }
  0x2e   :  { %v1213_v23 = vld [vmem:[#allocation5 + $0x8] ss:$12 sps:$4 sm:$0xff]   ;;  %v1168_v24 = vld [vmem:[#allocation5 + $0xf0] ss:$12 sps:$4 sm:$0xff]   ;;  %1039 = vmatprep.subr.bf16.mxu1 %v1212_v22  ;;  %v1214_v25 = vld [vmem:[#allocation5 + $0xe0] ss:$12 sps:$4 sm:$0xff]  }
  0x2f   :  { %1040 = vmatpush3.bf16.msra.mxu1 %v1213_v23  ;;  %v1215_v26 = vld [vmem:[#allocation5 + $0x20] ss:$12 sps:$4 sm:$0xff]   ;;  %v1216_v27 = vld [vmem:[#allocation5 + $0xf8] ss:$12 sps:$4 sm:$0xff]   ;;  %v1171_v29 = vld [vmem:[#allocation5 + $0x108] ss:$12 sps:$4 sm:$0xff]  }
  0x30   :  { %546 = vmatpush1.bf16.msra.mxu0 %v1144_v5  ;;  %1041 = vmatprep.subr.bf16.mxu1 %v1214_v25  ;;  %v1169_v28 = vld [vmem:[#allocation5 + $0x10c] ss:$12 sps:$4 sm:$0xff]   ;;  %v1218_v31 = vld [vmem:[#allocation5 + $0x110] ss:$12 sps:$4 sm:$0xff]   ;;  %v1220_v35 = vld [vmem:[#allocation5 + $0x128] ss:$12 sps:$4 sm:$0xff]  }
  0x31   :  { %547 = vmatprep.subr.bf16.mxu0 %v1145_v6  ;;  %v1217_v30 = vld [vmem:[#allocation5 + $0x38] ss:$12 sps:$4 sm:$0xff]   ;;  %v1174_v33 = vld [vmem:[#allocation5 + $0x120] ss:$12 sps:$4 sm:$0xff]   ;;  %v1219_v34 = vld [vmem:[#allocation5 + $0x50] ss:$12 sps:$4 sm:$0xff]  }
  0x32   :  { %v1172_v32 = vld [vmem:[#allocation5 + $0x124] ss:$12 sps:$4 sm:$0xff]   ;;  %v1175_v36 = vld [vmem:[#allocation5 + $0x13c] ss:$12 sps:$4 sm:$0xff]   ;;  %v1222_v39 = vld [vmem:[#allocation5 + $0x140] ss:$12 sps:$4 sm:$0xff]  }
  0x33   :  { %1042 = vmatpush3.bf16.msra.mxu1 %v1215_v26  ;;  %v1177_v37 = vld [vmem:[#allocation5 + $0x138] ss:$12 sps:$4 sm:$0xff]   ;;  %v1221_v38 = vld [vmem:[#allocation5 + $0x68] ss:$12 sps:$4 sm:$0xff]   ;;  %v1180_v41 = vld [vmem:[#allocation5 + $0x150] ss:$12 sps:$4 sm:$0xff]  }
  0x34   :  { %548 = vmatpush1.bf16.msra.mxu0 %v1147_v7  ;;  %1043 = vmatprep.subr.bf16.mxu1 %v1216_v27  ;;  %v1178_v40 = vld [vmem:[#allocation5 + $0x154] ss:$12 sps:$4 sm:$0xff]   ;;  %v1224_v43 = vld [vmem:[#allocation5 + $0x158] ss:$12 sps:$4 sm:$0xff]   ;;  %v1226_v47 = vld [vmem:[#allocation5 + $0x170] ss:$12 sps:$4 sm:$0xff]  }
  0x35   :  { %549 = vmatprep.subr.bf16.mxu0 %v1148_v8  ;;  %v1223_v42 = vld [vmem:[#allocation5 + $0x80] ss:$12 sps:$4 sm:$0xff]   ;;  %v1225_v45 = vld [vmem:[#allocation5 + $0x98] ss:$12 sps:$4 sm:$0xff]   ;;  %v1183_v46 = vld [vmem:[#allocation5 + $0x168] ss:$12 sps:$4 sm:$0xff]  }
  0x36   :  { %v1181_v44 = vld [vmem:[#allocation5 + $0x16c] ss:$12 sps:$4 sm:$0xff]   ;;  %v1189_v48 = vld [vmem:[#allocation5 + $0x184] ss:$12 sps:$4 sm:$0xff]   ;;  %v1184_v49 = vld [vmem:[#allocation2] ss:$12 sps:$4 sm:$0xff]  }
  0x37   :  { %1044 = vmatpush3.bf16.msra.mxu1 %v1217_v30  ;;  %v1227_v50 = vld [vmem:[#allocation5 + $0xb0] ss:$12 sps:$4 sm:$0xff]   ;;  %v1187_v51 = vld [vmem:[#allocation5 + $0x180] ss:$12 sps:$4 sm:$0xff]   ;;  %v1228_v53 = vld [vmem:[#allocation5 + $0x188] ss:$12 sps:$4 sm:$0xff]  }
  0x38   :  { %550 = vmatpush1.bf16.msra.mxu0 %v1150_v9  ;;  %1045 = vmatprep.subr.bf16.mxu1 %v1218_v31  ;;  %v1192_v52 = vld [vmem:[#allocation5 + $0x19c] ss:$12 sps:$4 sm:$0xff]   ;;  %v1190_v54 = vld [vmem:[#allocation5 + $0x198] ss:$12 sps:$4 sm:$0xff]   ;;  %v1320_v55 = vmov 0   ;;  %v1321_v57 = vmov 0.0  }
  0x39   :  { %551 = vmatprep.subr.bf16.mxu0 %v1151_v10  ;;  %v1195_v56 = vld [vmem:[#allocation5 + $0x1b4] ss:$12 sps:$4 sm:$0xff]   ;;  %vm1322_vm0 = vmmov 0   ;;  %v1193_v59 = vld [vmem:[#allocation5 + $0x1b0] ss:$12 sps:$4 sm:$0xff]   ;;  %vm717_vm1 = vcmask 523264  }
  0x3a   :  { %v1229_v58 = vld [vmem:[#allocation5 + $0x1a0] ss:$12 sps:$4 sm:$0xff]   ;;  %v1230_v61 = vld [vmem:[#allocation5 + $0x1b8] ss:$12 sps:$4 sm:$0xff]   ;;  %v1196_v62 = vld [vmem:[#allocation5 + $0x1c8] ss:$12 sps:$4 sm:$0xff]  }
  0x3b   :  { %1046 = vmatpush3.bf16.msra.mxu1 %v1219_v34  ;;  %v1198_v60 = vld [vmem:[#allocation5 + $0x1cc] ss:$12 sps:$4 sm:$0xff]   ;;  %v1201_v63 = vld [vmem:[#allocation5 + $0x1e4] ss:$12 sps:$4 sm:$0xff]   ;;  %v1204_v2 = vld [vmem:[#allocation5 + $0x1fc] ss:$12 sps:$4 sm:$0xff]  }
  0x3c   :  { %552 = vmatpush1.bf16.msra.mxu0 %v1153_v11  ;;  %1047 = vmatprep.subr.bf16.mxu1 %v1220_v35  ;;  %v1231_v0 = vld [vmem:[#allocation5 + $0x1d0] ss:$12 sps:$4 sm:$0xff]   ;;  %v1199_v1 = vld [vmem:[#allocation5 + $0x1e0] ss:$12 sps:$4 sm:$0xff]   ;;  %v1232_v3 = vld [vmem:[#allocation5 + $0x1e8] ss:$12 sps:$4 sm:$0xff]  }
  0x3d   :  { %553 = vmatprep.subr.bf16.mxu0 %v1154_v12  ;;  %v1202_v4 = vld [vmem:[#allocation5 + $0x1f8] ss:$12 sps:$4 sm:$0xff]   ;;  %v1207_v5 = vld [vmem:[#allocation5 + $0x214] ss:$12 sps:$4 sm:$0xff]   ;;  %v1205_v7 = vld [vmem:[#allocation5 + $0x210] ss:$12 sps:$4 sm:$0xff]  }
  0x3e   :  { %v1233_v6 = vld [vmem:[#allocation5 + $0x200] ss:$12 sps:$4 sm:$0xff]   ;;  %v1234_v9 = vld [vmem:[#allocation5 + $0x218] ss:$12 sps:$4 sm:$0xff]   ;;  %v1208_v10 = vld [vmem:[#allocation5 + $0x228] ss:$12 sps:$4 sm:$0xff]  }
  0x3f   :  { %1048 = vmatpush3.bf16.msra.mxu1 %v1221_v38  ;;  %v1210_v8 = vld [vmem:[#allocation5 + $0x22c] ss:$12 sps:$4 sm:$0xff]   ;;  %v1211_v11 = vld [vmem:[#allocation2 + $0x8] ss:$12 sps:$4 sm:$0xff]   ;;  %vm847_vm2 = vcmask 1043456   ;;  %vm819_vm4 = vcmask 64512  }
  0x40   :  { %554 = vmatpush1.bf16.msra.mxu0 %v1156_v14  ;;  %1049 = vmatprep.subr.bf16.mxu1 %v1222_v39  ;;  %v1235_v12 = vld [vmem:[#allocation5 + $0x230] ss:$12 sps:$4 sm:$0xff]   ;;  %vm939_vm5 = vcmask 519168   ;;  %s1323_s1 = smov [#allocation7]  }
  0x41   :  { %555 = vmatprep.subr.bf16.mxu0 %v1157_v15  ;;  %s947_s6 = sshll.u32 %s1323_s1, 4  ;;  %s948_s6 = int_to_ptr.vmem [resolvable:$true] %s947_s6 }
  0x42   :  { %s1288_s7 = scalar_lea.vmem %s948_s6, 128  ;;  %p1293_p3 = scmp.lt.s32.totalorder %s948_s6, %s948_s6 }
  0x43   :  { %1050 = vmatpush3.bf16.msra.mxu1 %v1223_v42  ;;  %p1289_p2 = scmp.ne.s32.totalorder %s948_s6, %s1288_s7  ;;  %p1294_p4 = scmp.lt.s32.totalorder %s1288_s7, %s1288_s7 }
  0x44   :  { %556 = vmatpush1.bf16.msra.mxu0 %v1159_v16  ;;  %1051 = vmatprep.subr.bf16.mxu1 %v1224_v43 }
  0x45   :  { %557 = vmatprep.subr.bf16.mxu0 %v1160_v17  ;;  %p1295_p5 = por %p1294_p4, %p1293_p3 }
  0x47   :  { %1052 = vmatpush3.bf16.msra.mxu1 %v1225_v45  ;;  %p1296_p6 = pnand %p1295_p5, %p1289_p2 }
  0x48   :  { %558 = vmatpush1.bf16.msra.mxu0 %v1162_v18  ;;  %1053 = vmatprep.subr.bf16.mxu1 %v1226_v47 }
  0x49   :  { %559 = vmatprep.subr.bf16.mxu0 %v1163_v19 }
  0x4b   :  { %1054 = vmatpush3.bf16.msra.mxu1 %v1227_v50 }
  0x4c   :  { %560 = vmatpush1.bf16.msra.mxu0 %v1165_v20  ;;  %1078 = vmatprep.subr.bf16.mxu1 %v1321_v57 }
  0x4d   :  { %561 = vmatprep.subr.bf16.mxu0 %v1166_v21 }
  0x4e   :  { %660 = vmatmul.mubr.bf16.vlgmr.msra.gmra.mrb[0].mxu1 %v1184_v49 }
  0x4f   :  { %1079 = vmatpush3.bf16.msra.mxu1 %v1228_v53  ;;  %1094 = vmatprep.mubr.msk.bf16.mxu1 %vm1322_vm0, %v1321_v57 }
  0x50   :  { %562 = vmatpush1.bf16.msra.mxu0 %v1168_v24  ;;  %1080 = vmatprep.subr.bf16.mxu1 %v1321_v57 }
  0x51   :  { %563 = vmatprep.subr.bf16.mxu0 %v1169_v28 }
  0x53   :  { %1081 = vmatpush3.bf16.msra.mxu1 %v1229_v58 }
  0x54   :  { %564 = vmatpush1.bf16.msra.mxu0 %v1171_v29  ;;  %1082 = vmatprep.subr.bf16.mxu1 %v1321_v57 }
  0x55   :  { %565 = vmatprep.subr.bf16.mxu0 %v1172_v32 }
  0x57   :  { %1083 = vmatpush3.bf16.msra.mxu1 %v1230_v61 }
  0x58   :  { %566 = vmatpush1.bf16.msra.mxu0 %v1174_v33  ;;  %1084 = vmatprep.subr.bf16.mxu1 %v1321_v57 }
  0x59   :  { %567 = vmatprep.subr.bf16.mxu0 %v1175_v36 }
  0x5b   :  { %1085 = vmatpush3.bf16.msra.mxu1 %v1231_v0 }
  0x5c   :  { %568 = vmatpush1.bf16.msra.mxu0 %v1177_v37  ;;  %1086 = vmatprep.subr.bf16.mxu1 %v1321_v57 }
  0x5d   :  { %569 = vmatprep.subr.bf16.mxu0 %v1178_v40 }
  0x5f   :  { %1087 = vmatpush3.bf16.msra.mxu1 %v1232_v3 }
  0x60   :  { %570 = vmatpush1.bf16.msra.mxu0 %v1180_v41  ;;  %1088 = vmatprep.subr.bf16.mxu1 %v1321_v57  ;;  %v810_v41 = vlaneseq }
  0x61   :  { %571 = vmatprep.subr.bf16.mxu0 %v1181_v44 }
  0x62   :  { %v811_v42 = vshrl.u32 %v810_v41, 7  ;;  %v813_v43 = vand.u32 127, %v810_v41 }
  0x63   :  { %1089 = vmatpush3.bf16.msra.mxu1 %v1233_v6 }
  0x64   :  { %572 = vmatpush1.bf16.msra.mxu0 %v1183_v46  ;;  %1090 = vmatprep.subr.bf16.mxu1 %v1321_v57  ;;  %vm814_vm3 = vcmp.le.s32.totalorder %v813_v43, %v811_v42 }
  0x65   :  { %584 = vmatprep.subr.bf16.mxu0 %v1189_v48 }
  0x67   :  { %574 = vmatmul.mubr.bf16.vlgmr.msra.gmra.mrb[0].mxu0 %v1184_v49  ;;  %1091 = vmatpush3.bf16.msra.mxu1 %v1234_v9 }
  0x68   :  { %585 = vmatpush1.bf16.msra.mxu0 %v1187_v51  ;;  %616 = vmatprep.mubr.bf16.mxu0 %v1320_v55 }
  0x69   :  { %586 = vmatprep.subr.bf16.mxu0 %v1192_v52  ;;  %1092 = vmatprep.subr.bf16.mxu1 %v1321_v57 }
  0x6b   :  { %1093 = vmatpush3.bf16.msra.mxu1 %v1235_v12 }
  0x6c   :  { %587 = vmatpush1.bf16.msra.mxu0 %v1190_v54  ;;  %1098 = vmatprep.subr.bf16.mxu1 %v1321_v57 }
  0x6d   :  { %588 = vmatprep.subr.bf16.mxu0 %v1195_v56 }
  0x6e   :  { %1095 = vmatmul.mubr.bf16.vlgmr.msra.gmra.mrb[4].mxu1 %v1211_v11 }
  0x6f   :  { %1100 = vmatprep.mubr.msk.bf16.mxu1 %vm1322_vm0, %v1321_v57 }
  0x70   :  { %589 = vmatpush1.bf16.msra.mxu0 %v1193_v59 }
  0x71   :  { %590 = vmatprep.subr.bf16.mxu0 %v1198_v60 }
  0x74   :  { %591 = vmatpush1.bf16.msra.mxu0 %v1196_v62 }
  0x75   :  { %592 = vmatprep.subr.bf16.mxu0 %v1201_v63 }
  0x78   :  { %593 = vmatpush1.bf16.msra.mxu0 %v1199_v1 }
  0x79   :  { %594 = vmatprep.subr.bf16.mxu0 %v1204_v2 }
  0x7c   :  { %595 = vmatpush1.bf16.msra.mxu0 %v1202_v4 }
  0x7d   :  { %596 = vmatprep.subr.bf16.mxu0 %v1207_v5 }
  0x80   :  { %597 = vmatpush1.bf16.msra.mxu0 %v1205_v7 }
  0x81   :  { %598 = vmatprep.subr.bf16.mxu0 %v1210_v8 }
  0x84   :  { %599 = vmatpush1.bf16.msra.mxu0 %v1208_v10 }
  0x87   :  { %617 = vmatmul.mubr.bf16.vlgmr.msra.gmra.mrb[0].mxu0 %v1211_v11 }
 0x121   :  { %v1055_v13 = vpop.f32.mrb[0].mxu1 }
 0x122   :  { %v1056_v14 = vpop.f32.mrb[1].mxu1 }
 0x123   :  { %v1057_v15 = vadd.f32 %v1056_v14, %v1055_v13  ;;  %v1058_v16 = vpop.f32.mrb[2].mxu1 }
 0x124   :  { %v1059_v17 = vpop.f32.mrb[3].mxu1 }
 0x125   :  { %v1060_v18 = vadd.f32 %v1059_v17, %v1058_v16 }
 0x141   :  { %v702_v24 = vpop.f32.mrb[4].mxu1 }
 0x142   :  { %v703_v26 = vadd.f32 %v1057_v15, %v702_v24  ;;  %v1096_v27 = vpop.f32.mrb[5].mxu1 }
 0x143   :  { %v705_v28 = vpop.f32.mrb[6].mxu1 }
 0x144   :  { %v706_v30 = vadd.f32 %v1060_v18, %v705_v28  ;;  %v1097_v31 = vpop.f32.mrb[7].mxu1  ;;  %v715_v38 = vpack.c.bf16 %v703_v26, %v703_v26 }
 0x146   :  { %v716_v33 = vpack.c.bf16 %v706_v30, %v706_v30  ;;  %v849_v40 = vsel %vm847_vm2, %v715_v38, 0 }
 0x148   :  { %v895_v35 = vsel %vm847_vm2, %v716_v33, 0 }
 0x15a   :  { %v618_v19 = vpop.f32.mrb[0].mxu0 }
 0x15b   :  { %v620_v20 = vpop.f32.mrb[1].mxu0  ;;  %v709_v29 = vmul.f32 0.05103104, %v618_v19 }
 0x15c   :  { %v713_v21 = vpack.c.bf16 %v620_v20, %v620_v20  ;;  %v622_v22 = vpop.f32.mrb[2].mxu0 }
 0x15d   :  { %v624_v23 = vpop.f32.mrb[3].mxu0  ;;  %v711_v34 = vpack.c.bf16 %v709_v29, %v709_v29  ;;  %v710_v37 = vmul.f32 0.05103104, %v622_v22 }
 0x15e   :  { %v722_v25 = vsel %vm717_vm1, %v713_v21, 0  ;;  %v714_v32 = vpack.c.bf16 %v624_v23, %v624_v23 }
 0x15f   :  { %1099 = vmatpush3.bf16.xpose.msra.mxu1 %v722_v25  ;;  %v712_v39 = vpack.c.bf16 %v710_v37, %v710_v37 }
 0x160   :  { %1104 = vmatprep.subr.bf16.mxu1 %v1321_v57  ;;  %v768_v36 = vsel %vm717_vm1, %v714_v32, 0 }
 0x166   :  { %1101 = vmatmul.mubr.msk.bf16.vlgmr.msra.gmra.mrb[8].mxu1 %vm717_vm1, %v711_v34 }
 0x167   :  { %1105 = vmatpush3.bf16.xpose.msra.mxu1 %v768_v36  ;;  %1106 = vmatprep.mubr.msk.bf16.mxu1 %vm1322_vm0, %v1321_v57 }
 0x168   :  { %1110 = vmatprep.subr.bf16.mxu1 %v1321_v57 }
 0x16e   :  { %1107 = vmatmul.mubr.msk.bf16.vlgmr.msra.gmra.mrb[12].mxu1 %vm717_vm1, %v712_v39 }
 0x16f   :  { %1111 = vmatpush3.bf16.msra.mxu1 %v849_v40  ;;  %1112 = vmatprep.mubr.msk.bf16.mxu1 %vm1322_vm0, %v1321_v57 }
 0x170   :  { %1116 = vmatprep.subr.bf16.mxu1 %v1321_v57 }
 0x239   :  { %v758_v44 = vpop.f32.mrb[8].mxu1 }
 0x23a   :  { %v817_v45 = vsel %vm814_vm3, %v758_v44, -inf  ;;  %v1102_v46 = vpop.f32.mrb[9].mxu1 }
 0x23b   :  { %v761_v47 = vpop.f32.mrb[10].mxu1  ;;  %v820_v48 = vsel %vm819_vm4, %v817_v45, -inf }
 0x23c   :  { %821 = vmax.xlane.f32.xlu0 %v820_v48  ;;  %v1103_v49 = vpop.f32.mrb[11].mxu1 }
 0x241   :  { %v804_v50 = vpop.f32.mrb[12].mxu1 }
 0x242   :  { %v818_v51 = vsel %vm814_vm3, %v804_v50, -inf  ;;  %v1108_v52 = vpop.f32.mrb[13].mxu1 }
 0x243   :  { %v807_v53 = vpop.f32.mrb[14].mxu1  ;;  %v823_v54 = vsel %vm819_vm4, %v818_v51, -inf }
 0x244   :  { %824 = vmax.xlane.f32.xlu0 %v823_v54  ;;  %v1109_v55 = vpop.f32.mrb[15].mxu1 }
 0x2c9   :  { %v822_v56 = vpop.xlane.xlu0 %821 }
 0x2ca   :  { %v826_v58 = vsub.f32 %v817_v45, %v822_v56 }
 0x2cc   :  { %v828_v59 = vmul.f32 1.442695, %v826_v58 }
 0x2ce   :  { %1236 = vpow2.f32 %v828_v59 }
 0x2d1   :  { %v825_v60 = vpop.xlane.xlu0 %824 }
 0x2d2   :  { %v827_v61 = vsub.f32 %v818_v51, %v825_v60 }
 0x2d4   :  { %v830_v62 = vmul.f32 1.442695, %v827_v61 }
 0x2d6   :  { %1238 = vpow2.f32 %v830_v62 }
 0x2d8   :  { %v1237_v63 = vpop.eup %1236 }
 0x2d9   :  { %v832_v0 = vsel %vm819_vm4, %v1237_v63, 0.0 }
 0x2da   :  { %833 = vadd.xlane.f32.xlu1 %v832_v0 }
 0x2e0   :  { %v1239_v1 = vpop.eup %1238 }
 0x2e1   :  { %v835_v2 = vsel %vm819_vm4, %v1239_v1, 0.0 }
 0x2e2   :  { %836 = vadd.xlane.f32.xlu1 %v835_v2 }
 0x367   :  { %v834_v3 = vpop.xlane.xlu1 %833 }
 0x368   :  { %1240 = vrcp.f32 %v834_v3 }
 0x36f   :  { %v837_v4 = vpop.xlane.xlu1 %836 }
 0x370   :  { %1242 = vrcp.f32 %v837_v4 }
 0x372   :  { %v1241_v5 = vpop.eup %1240 }
 0x373   :  { %v840_v6 = vmul.f32 %v1241_v5, %v1237_v63 }
 0x375   :  { %v842_v7 = vpack.c.bf16 %v840_v6, %v840_v6 }
 0x377   :  { %1113 = vmatmul.mubr.msk.bf16.vlgmr.msra.gmra.mrb[16].mxu1 %vm819_vm4, %v842_v7 }
 0x378   :  { %1117 = vmatpush3.bf16.msra.mxu1 %v895_v35  ;;  %1118 = vmatprep.mubr.msk.bf16.mxu1 %vm1322_vm0, %v1321_v57 }
 0x37a   :  { %v1243_v8 = vpop.eup %1242 }
 0x37b   :  { %v841_v9 = vmul.f32 %v1243_v8, %v1239_v1 }
 0x37d   :  { %v843_v10 = vpack.c.bf16 %v841_v9, %v841_v9 }
 0x37f   :  { %1119 = vmatmul.mubr.msk.bf16.vlgmr.msra.gmra.mrb[20].mxu1 %vm819_vm4, %v843_v10 }
 0x44a   :  { %v885_v11 = vpop.f32.mrb[16].mxu1 }
 0x44b   :  { %v937_v12 = vpack.c.bf16 %v885_v11, %v885_v11  ;;  %v1114_v13 = vpop.f32.mrb[17].mxu1 }
 0x44c   :  { %v888_v14 = vpop.f32.mrb[18].mxu1 }
 0x44d   :  { %940 = vst.msk [vmem:[#allocation7] sm:$0xf] %vm939_vm5, %v937_v12  ;;  %v1115_v15 = vpop.f32.mrb[19].mxu1 }
 0x452   :  { %v931_v16 = vpop.f32.mrb[20].mxu1 }
 0x453   :  { %v938_v17 = vpack.c.bf16 %v931_v16, %v931_v16  ;;  %v1120_v18 = vpop.f32.mrb[21].mxu1 }
 0x454   :  { %v934_v19 = vpop.f32.mrb[22].mxu1 }
 0x455   :  { %941 = vst.msk [vmem:[#allocation7 + $0x4] sm:$0xf] %vm939_vm5, %v938_v17  ;;  %v1121_v57 = vpop.f32.mrb[23].mxu1 }
 0x456   :  { %1299 = shalt.err (!%p1296_p6)
}
 0x457   :  { %s1300_s10 = scalar_lea.hbm %s1411_s2, 128 }
 0x458   :  { %p1301_p7 = scmp.ne.s32.totalorder %s1411_s2, %s1300_s10  ;;  %p1304_p8 = scmp.lt.u32.totalorder %s1300_s10, %s1411_s2 }
 0x45a   :  { %p1306_p9 = pnand %p1304_p8, %p1301_p7 }
 0x45c   :  { %1309 = shalt.err (!%p1306_p9)
}
 0x45d   :  { %s1324_s15 = smov 64   ;;  %s1325_s16 = smov 4  }
 0x45e   :  { %953 = dma.vmem_to_hbm [thread:$0]  %s948_s6, 128, %s1411_s2, [#allocation4], %s1324_s15, %s1324_s15, %s1325_s16  }
 0x45f   :  { %1314 = dma.done.wait [#allocation4], 128  }
 0x460   :  { %1315 = vsyncadd [#allocation4], 4294967168 }
 0x461   :  { %957 = vsyncpa [#allocation3], 1 }
 0x462   :  { %958 = vsyncpa [#allocation6], 1 }
 0x463   :  { %959 = vsyncpa [#allocation4], 1 }

</bundles_post_ra>
